<compile_context>
chip_gen: v7x
topology: tpu7x:2x2x1
jax: 0.10.0
libtpu: 0.0.40
codegen_flags: <defaults>
</compile_context>

<pallas_src>
import functools

import jax
import jax.numpy as jnp
from jax.experimental import pallas as pl
from jax.experimental.pallas import tpu as pltpu

_VMEM_LIMIT_BYTES = 32 * 1024 * 1024   # > v5e's 16 MiB scoped default, <= physical on all gens
_MIN_GRID_STEPS = 8                    # >= 4 iterations per TensorCore on v7x (2 TCs)


def _round_up(x, m):
    return -(-x // m) * m


@functools.lru_cache(maxsize=1)
def _target_tile_bytes():
    """~4 MiB tiles on 128 MiB-VMEM parts (v5e/v6e), ~2 MiB on v7x (64 MiB)."""
    try:
        info = pltpu.get_tpu_info()
        vmem = getattr(info, "vmem_capacity_bytes", 0) or 0
        if vmem >= 100 * 1024 * 1024:
            return 4 * 1024 * 1024
    except Exception:
        pass
    return 2 * 1024 * 1024


def _sublane_multiple(itemsize):
    # f32 -> 8 rows, bf16 -> 16, int8/fp8 -> 32 (match packed sublane layout).
    return max(8, 32 // max(int(itemsize), 1))


def _pick_row_tile(R, C, itemsize, target_bytes):
    """Rows per block for the channels_last (R, C) kernel."""
    sub = _sublane_multiple(itemsize)
    t = max(sub, (target_bytes // (itemsize * C)) // sub * sub)
    # Cap so the grid has >= _MIN_GRID_STEPS steps: keeps input DMA / compute /
    # writeback overlapped and the two v7x TensorCores balanced.
    t = min(t, _round_up(-(-R // _MIN_GRID_STEPS), sub))
    t = max(t, sub)
    return R if t >= R else t


def _pick_cf_tiling(N, C, HW, itemsize, target_bytes):
    """(images per step, H*W columns per step) for the channels_first kernel."""
    if HW <= 128:
        col_tile = HW
    else:
        t = max(128, (target_bytes // (itemsize * C)) // 128 * 128)
        # how many HW-steps we need, given N batch steps, to reach MIN_GRID_STEPS
        hw_div = max(1, -(-_MIN_GRID_STEPS // N))
        t = min(t, _round_up(-(-HW // hw_div), 128))
        t = max(t, 128)
        col_tile = HW if t >= HW else t
    if col_tile == HW:
        # One image's slab fits in a step: batch several images per step so the
        # step still moves ~target bytes (ConvNeXt 14x14 / 7x7 stages).
        slab = C * HW * itemsize
        k = max(1, min(N, target_bytes // max(slab, 1)))
        k = min(k, max(1, -(-N // 4)))   # keep >= ~4 batch steps when N allows
    else:
        k = 1
    return int(k), int(col_tile)


# ---------------------------------------------------------------------------
# Kernels
# ---------------------------------------------------------------------------

def _ln_lanes_kernel(x_ref, w_ref, b_ref, o_ref, *, eps, inv_c):
    # channels_last: x_ref/o_ref (TR, C); w_ref/b_ref (1, C).  Normalize over
    # C (lanes).  Single fused pass: sum and sum-of-squares together.
    x = x_ref[...].astype(jnp.float32)
    mean = jnp.sum(x, axis=-1, keepdims=True) * inv_c
    meansq = jnp.sum(x * x, axis=-1, keepdims=True) * inv_c
    var = jnp.maximum(meansq - mean * mean, 0.0)
    y = (x - mean) * jax.lax.rsqrt(var + eps)
    o_ref[...] = (y * w_ref[...] + b_ref[...]).astype(o_ref.dtype)


def _ln_sublanes_kernel(x_ref, w_ref, b_ref, o_ref, *, eps, inv_c):
    # channels_first: x_ref/o_ref (k, C, T) with T = H*W tile on lanes;
    # w_ref/b_ref (C, 1).  Normalize over C (axis 1).
    x = x_ref[...].astype(jnp.float32)
    mean = jnp.sum(x, axis=1, keepdims=True) * inv_c
    meansq = jnp.sum(x * x, axis=1, keepdims=True) * inv_c
    var = jnp.maximum(meansq - mean * mean, 0.0)
    y = (x - mean) * jax.lax.rsqrt(var + eps)
    w = w_ref[...][None, :, :]
    b = b_ref[...][None, :, :]
    o_ref[...] = (y * w + b).astype(o_ref.dtype)


def _x_spec(block_shape, index_map, buffered):
    if buffered:
        # 3-deep pipelining on the big streaming input (cheap in VMEM, hides
        # short per-step DMAs, esp. on v7x's 3.2 TB/s HBM).
        return pl.BlockSpec(block_shape, index_map, pipeline_mode=pl.Buffered(3))
    return pl.BlockSpec(block_shape, index_map)


# ---------------------------------------------------------------------------
# Wrappers
# ---------------------------------------------------------------------------

def _layernorm_channels_last(x, weight, bias, eps):
    """x: (..., C) -- normalize over the trailing C dim."""
    orig_shape = x.shape
    C = orig_shape[-1]
    x2 = x.reshape(-1, C)
    R = x2.shape[0]
    itemsize = jnp.dtype(x2.dtype).itemsize
    row_tile = _pick_row_tile(R, C, itemsize, _target_tile_bytes())
    w2 = weight.reshape(1, C).astype(jnp.float32)
    b2 = bias.reshape(1, C).astype(jnp.float32)

    def build(buffered):
        return pl.pallas_call(
            functools.partial(_ln_lanes_kernel, eps=float(eps), inv_c=1.0 / C),
            out_shape=jax.ShapeDtypeStruct((R, C), x2.dtype),
            grid_spec=pltpu.PrefetchScalarGridSpec(
                num_scalar_prefetch=0,
                grid=(pl.cdiv(R, row_tile),),
                in_specs=[
                    _x_spec((row_tile, C), lambda i: (i, 0), buffered),
                    pl.BlockSpec((1, C), lambda i: (0, 0)),
                    pl.BlockSpec((1, C), lambda i: (0, 0)),
                ],
                out_specs=pl.BlockSpec((row_tile, C), lambda i: (i, 0)),
            ),
            compiler_params=pltpu.CompilerParams(
                dimension_semantics=("parallel",),
                vmem_limit_bytes=_VMEM_LIMIT_BYTES,
            ),
        )

    try:
        out = build(True)(x2, w2, b2)
    except Exception:
        # Fallback: default double buffering if 3-deep buffering is unsupported.
        out = build(False)(x2, w2, b2)
    return out.reshape(orig_shape)


def _layernorm_channels_first(x, weight, bias, eps):
    """x: (N, C, H, W) -- normalize over the channel axis, no transposes."""
    N, C, H, W = x.shape
    HW = H * W
    x3 = x.reshape(N, C, HW)
    itemsize = jnp.dtype(x3.dtype).itemsize
    k, col_tile = _pick_cf_tiling(N, C, HW, itemsize, _target_tile_bytes())
    w2 = weight.reshape(C, 1).astype(jnp.float32)
    b2 = bias.reshape(C, 1).astype(jnp.float32)

    def build(buffered):
        return pl.pallas_call(
            functools.partial(_ln_sublanes_kernel, eps=float(eps), inv_c=1.0 / C),
            out_shape=jax.ShapeDtypeStruct((N, C, HW), x3.dtype),
            grid_spec=pltpu.PrefetchScalarGridSpec(
                num_scalar_prefetch=0,
                grid=(pl.cdiv(N, k), pl.cdiv(HW, col_tile)),
                in_specs=[
                    _x_spec((k, C, col_tile), lambda n, j: (n, 0, j), buffered),
                    pl.BlockSpec((C, 1), lambda n, j: (0, 0)),
                    pl.BlockSpec((C, 1), lambda n, j: (0, 0)),
                ],
                out_specs=pl.BlockSpec((k, C, col_tile), lambda n, j: (n, 0, j)),
            ),
            compiler_params=pltpu.CompilerParams(
                dimension_semantics=("parallel", "parallel"),
                vmem_limit_bytes=_VMEM_LIMIT_BYTES,
            ),
        )

    try:
        out = build(True)(x3, w2, b2)
    except Exception:
        out = build(False)(x3, w2, b2)
    return out.reshape(N, C, H, W)


class LayerNorm:
    """JAX/Pallas port of fastreid ConvNeXt LayerNorm."""

    def __init__(self, normalized_shape, eps=1e-06, data_format="channels_last"):
        if data_format not in ["channels_last", "channels_first"]:
            raise NotImplementedError
        self.weight = jnp.ones((normalized_shape,), jnp.float32)
        self.bias = jnp.zeros((normalized_shape,), jnp.float32)
        self.eps = eps
        self.data_format = data_format
        self.normalized_shape = (normalized_shape,)

    def __call__(self, x):
        C = self.normalized_shape[0]
        if self.data_format == "channels_last":
            assert x.shape[-1] == C
            return _layernorm_channels_last(x, self.weight, self.bias, self.eps)
        else:
            assert x.shape[1] == C
            return _layernorm_channels_first(x, self.weight, self.bias, self.eps)


# ---------------------------------------------------------------------------
# References + self-test
# ---------------------------------------------------------------------------

def _reference_channels_first(x, w, b, eps):
    u = jnp.mean(x, axis=1, keepdims=True)
    s = jnp.mean((x - u) ** 2, axis=1, keepdims=True)
    xn = (x - u) / jnp.sqrt(s + eps)
    return w[None, :, None, None] * xn + b[None, :, None, None]


def _reference_channels_last(x, w, b, eps):
    u = jnp.mean(x, axis=-1, keepdims=True)
    s = jnp.mean((x - u) ** 2, axis=-1, keepdims=True)
    xn = (x - u) / jnp.sqrt(s + eps)
    return xn * w + b


if __name__ == "__main__":
    key = jax.random.PRNGKey(0)
    k1, k2, k3, k4 = jax.random.split(key, 4)

    N, C, H, W = 2, 4, 16, 16

    # --- channels_first (NCHW), non-trivial weight/bias ---
    ln_cf = LayerNorm(C, eps=1e-6, data_format="channels_first")
    ln_cf.weight = jax.random.normal(k1, (C,), jnp.float32)
    ln_cf.bias = jax.random.normal(k2, (C,), jnp.float32)
    x_cf = jax.random.normal(k3, (N, C, H, W), jnp.float32)

    y_cf = jax.block_until_ready(ln_cf(x_cf))
    ref_cf = _reference_channels_first(x_cf, ln_cf.weight, ln_cf.bias, ln_cf.eps)
    assert y_cf.shape == x_cf.shape and y_cf.dtype == x_cf.dtype
    assert jnp.max(jnp.abs(y_cf - ref_cf)) < 1e-4

    # --- channels_last (NHWC) ---
    ln_cl = LayerNorm(C, eps=1e-6, data_format="channels_last")
    ln_cl.weight = ln_cf.weight
    ln_cl.bias = ln_cf.bias
    x_cl = jax.random.normal(k4, (N, H, W, C), jnp.float32)

    y_cl = jax.block_until_ready(ln_cl(x_cl))
    ref_cl = _reference_channels_last(x_cl, ln_cl.weight, ln_cl.bias, ln_cl.eps)
    assert y_cl.shape == x_cl.shape and y_cl.dtype == x_cl.dtype
    assert jnp.max(jnp.abs(y_cl - ref_cl)) < 1e-4

    print("KERNEL_OK")
</pallas_src>

<mosaic_0001>
module attributes {stable_mosaic.version = 11 : i64} {
  func.func @_ln_sublanes_kernel(%arg0: i32, %arg1: i32, %arg2: memref<1x4x128xf32, #tpu.memory_space<vmem>>, %arg3: memref<4x1xf32, #tpu.memory_space<vmem>>, %arg4: memref<4x1xf32, #tpu.memory_space<vmem>>, %arg5: memref<1x4x128xf32, #tpu.memory_space<vmem>>) attributes {dimension_semantics = [#tpu.dimension_semantics<parallel>, #tpu.dimension_semantics<parallel>], iteration_bounds = array<i64: 2, 2>, scalar_prefetch = 0 : i64, scratch_operands = 0 : i64, tpu.core_type = #tpu.core_type<tc>, window_params = [{transform_indices = @transform_0, window_bounds = array<i64: 1, 4, 128>}, {pipeline_mode = #tpu.pipeline_mode<synchronous>, transform_indices = @transform_1, window_bounds = array<i64: 4, 1>}, {pipeline_mode = #tpu.pipeline_mode<synchronous>, transform_indices = @transform_2, window_bounds = array<i64: 4, 1>}, {transform_indices = @transform_3, window_bounds = array<i64: 1, 4, 128>}]} {
    %c0 = arith.constant 0 : index
    %c0_0 = arith.constant 0 : index
    %c0_1 = arith.constant 0 : index
    %0 = vector.load %arg2[%c0, %c0_0, %c0_1] : memref<1x4x128xf32, #tpu.memory_space<vmem>>, vector<1x4x128xf32>
    %cst = arith.constant dense<0.000000e+00> : vector<1x128xf32>
    %1 = vector.multi_reduction <add>, %0, %cst [1] : vector<1x4x128xf32> to vector<1x128xf32>
    %2 = vector.shape_cast %1 : vector<1x128xf32> to vector<1x1x128xf32>
    %cst_2 = arith.constant 2.500000e-01 : f32
    %3 = vector.broadcast %cst_2 : f32 to vector<1x1x128xf32>
    %4 = arith.mulf %2, %3 : vector<1x1x128xf32>
    %5 = arith.mulf %0, %0 : vector<1x4x128xf32>
    %cst_3 = arith.constant dense<0.000000e+00> : vector<1x128xf32>
    %6 = vector.multi_reduction <add>, %5, %cst_3 [1] : vector<1x4x128xf32> to vector<1x128xf32>
    %7 = vector.shape_cast %6 : vector<1x128xf32> to vector<1x1x128xf32>
    %cst_4 = arith.constant 2.500000e-01 : f32
    %8 = vector.broadcast %cst_4 : f32 to vector<1x1x128xf32>
    %9 = arith.mulf %7, %8 : vector<1x1x128xf32>
    %10 = arith.mulf %4, %4 : vector<1x1x128xf32>
    %11 = arith.subf %9, %10 : vector<1x1x128xf32>
    %cst_5 = arith.constant 0.000000e+00 : f32
    %12 = vector.broadcast %cst_5 : f32 to vector<1x1x128xf32>
    %13 = arith.maximumf %11, %12 : vector<1x1x128xf32>
    %14 = vector.broadcast %4 : vector<1x1x128xf32> to vector<1x4x128xf32>
    %15 = arith.subf %0, %14 : vector<1x4x128xf32>
    %cst_6 = arith.constant 9.99999997E-7 : f32
    %16 = vector.broadcast %cst_6 : f32 to vector<1x1x128xf32>
    %17 = arith.addf %13, %16 : vector<1x1x128xf32>
    %18 = math.rsqrt %17 : vector<1x1x128xf32>
    %19 = vector.broadcast %18 : vector<1x1x128xf32> to vector<1x4x128xf32>
    %20 = arith.mulf %15, %19 : vector<1x4x128xf32>
    %c0_7 = arith.constant 0 : index
    %c0_8 = arith.constant 0 : index
    %21 = vector.load %arg3[%c0_7, %c0_8] : memref<4x1xf32, #tpu.memory_space<vmem>>, vector<4x1xf32>
    %22 = vector.shape_cast %21 : vector<4x1xf32> to vector<1x4x1xf32>
    %c0_9 = arith.constant 0 : index
    %c0_10 = arith.constant 0 : index
    %23 = vector.load %arg4[%c0_9, %c0_10] : memref<4x1xf32, #tpu.memory_space<vmem>>, vector<4x1xf32>
    %24 = vector.shape_cast %23 : vector<4x1xf32> to vector<1x4x1xf32>
    %25 = vector.broadcast %22 : vector<1x4x1xf32> to vector<1x4x128xf32>
    %26 = arith.mulf %20, %25 : vector<1x4x128xf32>
    %27 = vector.broadcast %24 : vector<1x4x1xf32> to vector<1x4x128xf32>
    %28 = arith.addf %26, %27 : vector<1x4x128xf32>
    %c0_11 = arith.constant 0 : index
    %c0_12 = arith.constant 0 : index
    %c0_13 = arith.constant 0 : index
    %29 = vector.load %arg5[%c0_11, %c0_12, %c0_13] : memref<1x4x128xf32, #tpu.memory_space<vmem>>, vector<1x4x128xf32>
    tpu.vector_store %arg5[%c0_11, %c0_12, %c0_13], %28 {strides = array<i32>} : memref<1x4x128xf32, #tpu.memory_space<vmem>>, vector<1x4x128xf32>,
    return
  }
  func.func @transform_0(%arg0: i32, %arg1: i32) -> (i32, i32, i32) {
    %c0_i32 = arith.constant 0 : i32
    %c0_i32_0 = arith.constant 0 : i32
    return %arg0, %c0_i32, %arg1 : i32, i32, i32
  }
  func.func @transform_1(%arg0: i32, %arg1: i32) -> (i32, i32) {
    %c0_i32 = arith.constant 0 : i32
    %c0_i32_0 = arith.constant 0 : i32
    %c0_i32_1 = arith.constant 0 : i32
    return %c0_i32, %c0_i32_0 : i32, i32
  }
  func.func @transform_2(%arg0: i32, %arg1: i32) -> (i32, i32) {
    %c0_i32 = arith.constant 0 : i32
    %c0_i32_0 = arith.constant 0 : i32
    %c0_i32_1 = arith.constant 0 : i32
    return %c0_i32, %c0_i32_0 : i32, i32
  }
  func.func @transform_3(%arg0: i32, %arg1: i32) -> (i32, i32, i32) {
    %c0_i32 = arith.constant 0 : i32
    %c0_i32_0 = arith.constant 0 : i32
    return %arg0, %c0_i32, %arg1 : i32, i32, i32
  }
}

</mosaic_0001>

<bundles_post_ra>
// kernel: tpu_custom_call.1
= control target key start
LH: loop header
LB: loop body
LE: loop exit
PB: predicated region body
PF: predicated region fallthrough
CT: control target
= control target key end

     0   :  { %8 = vsyncpa [#allocation3], 0  ;;  %s800_s0 = inlined_call_operand.hbm [shape: f32[2,4,256], index: 0, kind: input, shape index: {}]   ;;  %s801_s1 = inlined_call_operand.vmem [shape: f32[4,1], index: 1, kind: input, shape index: {}]   ;;  %s802_s2 = inlined_call_operand.vmem [shape: f32[4,1], index: 2, kind: input, shape index: {}]   ;;  %s803_s3 = inlined_call_operand.hbm [shape: f32[2,4,256], index: 3, kind: output, shape index: {}]  }
   0x1   :  { %10 = vsyncpa [#allocation3 + $0x1], 0 }
   0x2   :  { %11 = vsyncpa [#allocation4], 0 }
   0x3   :  { %13 = vsyncpa [#allocation4 + $0x1], 0  ;;  %s596_s12 = smov 0   ;;  %s598_s13 = smov 0  }
   0x4   :  { %s600_s14 = smov 0   ;;  %s602_s15 = smov 0  }
   0x5   :  { %s604_s16 = smov 0   ;;  %s606_s17 = smov 0  }
   0x6   :  { %s608_s18 = smov 0   ;;  %s610_s19 = smov 0  }
   0x7 LB: > { %s346_s20 = sadd.s32 4294967295, %s571_s19   ;;  %s347_s21 = sadd.s32 4294967294, %s571_s19   ;;  %s571_s19 = sphi %s610_s19, %s19_s19   ;;  %s567_s18 = sphi %s608_s18, %s820_s18   ;;  %s563_s17 = sphi %s606_s17, %s819_s17   ;;  %s559_s16 = sphi %s604_s16, %s818_s16   ;;  %s555_s15 = sphi %s602_s15, %s817_s15   ;;  %s551_s14 = sphi %s600_s14, %s816_s14   ;;  %s547_s13 = sphi %s598_s13, %s815_s13   ;;  %s543_s12 = sphi %s596_s12, %s814_s12  }
   0x8   : > { %s28_s22 = sadd.s32 1, %s563_s17  ;;  %s31_s23 = sadd.s32 1, %s567_s18 }
   0x9   : > { %p29_p0 = scmp.ge.s32.totalorder %s28_s22, 2  ;;  %s40_s24 = sadd.s32 1, %s551_s14 }
   0xa   : > { %p47_p1 = scmp.ne.s32.totalorder %s551_s14, %s547_s13  ;;  %p48_p2 = scmp.eq.s32.totalorder %s571_s19, 0 }
   0xb   : > { %s822_s22 = smov (%p29_p0, %s28_s22), 0  ;;  %s824_s23 = smov (!%p29_p0, %s31_s23), %s567_s18 }
   0xc   : > { %s36_s25 = ssub.s32 %s563_s17, %s822_s22  ;;  %p649_p3 = por %p48_p2, %p47_p1 }
   0xd   : > { %p33_p4 = scmp.ge.s32.totalorder %s824_s23, 2  ;;  %p53_p5 = scmp.ne.s32.totalorder %s547_s13, %s543_s12 }
   0xe   : > { %p54_p6 = scmp.eq.s32.totalorder %s346_s20, 0  ;;  %p121_p7 = scmp.eq.s32.totalorder %s346_s20, 3 }
   0xf   : > { %s826_s23 = smov (%p33_p4, %s824_s23), 0  ;;  %p127_p10 = scmp.eq.s32.totalorder %s347_s21, 3 }
  0x10   : > { %p657_p8 = por %p54_p6, %p53_p5  ;;  %p661_p9 = por %p121_p7, %p47_p1 }
  0x11   : > { %s35_s29 = ssub.s32 %s567_s18, %s826_s23  ;;  %p667_p12 = por %p127_p10, %p53_p5 }
  0x12   : > { %s807_s28 = scalar_select %p661_p9, 1, 0 }
  0x13   : > { %s37_s30 = sor.u32 %s36_s25, %s35_s29  ;;  %p373_p13 = scmp.lt.s32.totalorder %s571_s19, 4 }
  0x14   : > { %p38_p11 = scmp.eq.s32.totalorder %s37_s30, 0  ;;  %s153_s5 = sand.u32 1, %s551_s14  }
  0x15   : > { %s808_s4 = scalar_select %p667_p12, 1, 0 }
  0x16   : > { %s674_s6 = scalar_select %p38_p11, %s551_s14, %s40_s24  }
  0x17   : > { %s350_s7 = sshll.u32 %s153_s5, 2  ;;  %s351_s8 = sshll.u32 %s567_s18, 1 }
  0x18   : > { %s162_s9 = sadd.s32 %s563_s17, %s351_s8  ;;  %s157_s10 = scalar_lea.vmem [#allocation2], %s350_s7 }
  0x19   : > { %s166_s11 = sshll.u32 %s157_s10, 4  ;;  %s352_s20 = sshll.u32 %s162_s9, 6  ;;  %s678_s11 = int_to_ptr.vmem [resolvable:$true] %s166_s11 }
  0x1a   : > { %s683_s29 = scalar_lea.hbm %s800_s0, %s352_s20  ;;  %p687_p0 = pnand %p373_p13, %p649_p3 }
  0x1b   : > { %s154_s30 = scalar_lea.sflag [#allocation3], %s153_s5  ;;  %s443_s7 = scalar_lea.hbm %s683_s29, 64 }
  0x1c   : > { %p444_p4 = scmp.ne.s32.totalorder %s683_s29, %s443_s7  ;;  %p445_p5 = pneg %p687_p0 }
  0x1d   : > { %s448_s9 = scalar_lea.hbm %s800_s0, 256  ;;  %p449_p3 = scmp.lt.u32.totalorder %s683_s29, %s800_s0 }
  0x1e   : > { %p446_p6 = pnand %p445_p5, %p444_p4  ;;  %p450_p10 = scmp.lt.u32.totalorder %s448_s9, %s443_s7 }
  0x1f   : > { %p452_p13 = scmp.lt.u32.totalorder %s443_s7, %s683_s29 }
  0x20   : > { %p447_p7 = pneg %p446_p6  ;;  %p451_p11 = por %p450_p10, %p449_p3 }
  0x22   : > { %p453_p1 = por %p452_p13, %p451_p11 }
  0x24   : > { %p454_p2 = pnand %p453_p1, %p447_p7 }
  0x26   : > { %457 = shalt.err (!%p454_p2)
}
  0x27   : > { %s458_s5 = scalar_lea.vmem %s678_s11, 64  ;;  %s573_s21 = smov [#allocation2]  }
  0x28   : > { %p459_p4 = scmp.ne.s32.totalorder %s678_s11, %s458_s5  ;;  %s463_s25 = sshll.u32 %s573_s21, 4  ;;  %s464_s25 = int_to_ptr.vmem [resolvable:$false] %s463_s25 }
  0x29   : > { %s465_s26 = scalar_lea.vmem %s464_s25, 128  ;;  %p466_p9 = scmp.lt.s32.totalorder %s678_s11, %s464_s25 }
  0x2a   : > { %p461_p6 = pnand %p459_p4, %p445_p5  ;;  %p467_p3 = scmp.lt.s32.totalorder %s465_s26, %s458_s5 }
  0x2c   : > { %p462_p12 = pneg %p461_p6  ;;  %p468_p10 = por %p467_p3, %p466_p9 }
  0x2e   : > { %p469_p11 = pnand %p468_p10, %p462_p12 }
  0x30   : > { %472 = shalt.err (!%p469_p11)
}
  0x31   : > { %368 = dma.hbm_to_vmem [thread:$0]  (!%p687_p0), %s683_s29, 64, %s678_s11, %s154_s30  }
  0x32   : > { %p810_p1 = scmp.lt.s32.totalorder %s571_s19, 5  ;;  %p811_p2 = scmp.ge.s32.totalorder %s571_s19, 1 }
  0x34   : > { %p172_p5 = pnand %p811_p2, %p810_p1 }
  0x35   : > { %s723_s7 = sand.u32 (!%p172_p5), 1, %s547_s13  }
  0x36   : > { %175 = sbr.rel (%p172_p5) target bundleno = 212 (0xd4), region = 32  ;;  %s354_s8 = sshll.u32 (!%p172_p5), %s723_s7, 2 }
  0x37   : > { %s178_s9 = scalar_lea.sflag (!%p172_p5), [#allocation3], %s723_s7  ;;  %s181_s24 = scalar_lea.vmem (!%p172_p5), [#allocation2], %s354_s8 }
  0x3d   : > { %534 = dma.done.wait (%p657_p8), %s178_s9, 64  }
  0x3e   : > { %536 = vsyncadd (%p657_p8), %s178_s9, 4294967232  ;;  %v574_v0 = vmov 0   ;;  %v230_v1 = vld [vmem:[%s801_s1] sm:$0xf]  ;;  %vm205_vm0 = vcmask 1043456   ;;  %s357_s27 = sshll.u32 %s559_s16, 1 }
  0x3f   : > { %440 = vset.pattern.permute.xlu0 %v574_v0  ;;  %v231_v2 = vld [vmem:[%s802_s2] sm:$0xf]  ;;  %s257_s20 = sadd.s32 %s555_s15, %s357_s27  ;;  %s203_s21 = scalar_lea.vmem [#allocation5], %s354_s8 }
  0x40   : > { %234 = vperm.xlu0 %440, %v230_v1   ;;  %v204_v3 = vld [vmem:[%s181_s24] sm:$0xf]  ;;  %s358_s5 = sshll.u32 %s257_s20, 6  ;;  %s261_s25 = sshll.u32 %s203_s21, 4  ;;  %s748_s25 = int_to_ptr.vmem [resolvable:$true] %s261_s25 }
  0x41   : > { %v206_v4 = vsel %vm205_vm0, %v204_v3, 0.0  ;;  %v214_v5 = vmul.f32 %v204_v3, %v204_v3  ;;  %s746_s24 = scalar_lea.hbm %s803_s3, %s358_s5  ;;  %s246_s15 = scalar_lea.sflag [#allocation4], %s723_s7 }
  0x42   : > { %v207_v6 = vrot.slane %v206_v4, 4  ;;  %s473_s16 = scalar_lea.vmem %s748_s25, 64  ;;  %p812_p9 = scmp.ne.s32.totalorder %s807_s28, 0 }
  0x43   : > { %v215_v7 = vsel %vm205_vm0, %v214_v5, 0.0  ;;  %p474_p8 = scmp.ne.s32.totalorder %s748_s25, %s473_s16  ;;  %s575_s8 = smov [#allocation5]  }
  0x44   : > { %240 = vperm.xlu0 %440, %v231_v2   ;;  %v208_v8 = vadd.f32 %v207_v6, %v206_v4  ;;  %v216_v9 = vrot.slane %v215_v7, 4  ;;  %s477_s11 = sshll.u32 %s575_s8, 4  ;;  %s478_s11 = int_to_ptr.vmem [resolvable:$false] %s477_s11 }
  0x45   : > { %p475_p12 = pnand %p474_p8, %p812_p9  ;;  %s479_s29 = scalar_lea.vmem %s478_s11, 128 }
  0x46   : > { %v209_v10 = vrot.slane %v208_v8, 2  ;;  %v217_v11 = vadd.f32 %v216_v9, %v215_v7  ;;  %p480_p7 = scmp.lt.s32.totalorder %s748_s25, %s478_s11  ;;  %p481_p13 = scmp.lt.s32.totalorder %s479_s29, %s473_s16 }
  0x47   : > { %p476_p0 = pneg %p475_p12 }
  0x48   : > { %v210_v12 = vadd.f32 %v209_v10, %v208_v8  ;;  %v218_v13 = vrot.slane %v217_v11, 2  ;;  %p482_p4 = por %p481_p13, %p480_p7 }
  0x4a   : > { %v211_v14 = vrot.slane %v210_v12, 1  ;;  %v219_v15 = vadd.f32 %v218_v13, %v217_v11  ;;  %p483_p6 = pnand %p482_p4, %p476_p0 }
  0x4c   : > { %v212_v16 = vadd.f32 %v211_v14, %v210_v12  ;;  %v220_v17 = vrot.slane %v219_v15, 1 }
  0x4e   : > { %v213_v18 = vmul.f32 0.25, %v212_v16  ;;  %v221_v19 = vadd.f32 %v220_v17, %v219_v15 }
  0x50   : > { %v222_v20 = vmul.f32 0.25, %v221_v19  ;;  %v223_v21 = vmul.f32 %v213_v18, %v213_v18  ;;  %v226_v25 = vsub.f32 %v204_v3, %v213_v18 }
  0x52   : > { %v224_v22 = vsub.f32 %v222_v20, %v223_v21 }
  0x54   : > { %v225_v23 = vmax.f32 %v224_v22, 0.0 }
  0x56   : > { %v227_v24 = vadd.f32 1e-06, %v225_v23 }
  0x58   : > { %441 = vrsqrt.f32 %v227_v24 }
  0x62   : > { %v442_v26 = vpop.eup %441 }
  0x63   : > { %v229_v27 = vmul.f32 %v442_v26, %v226_v25 }
  0xbf   : > { %v235_v28 = vpop.permute.xlu0 %234 }
  0xc0   : > { %v237_v29 = vmul.f32 %v235_v28, %v229_v27 }
  0xc3   : > { %v241_v30 = vpop.permute.xlu0 %240 }
  0xc4   : > { %v243_v31 = vadd.f32 %v241_v30, %v237_v29 }
  0xc6   : > { %244 = vst [vmem:[%s203_s21] sm:$0xf] %v243_v31 }
  0xc7   : > { %486 = shalt.err (!%p483_p6)
}
  0xc8   : > { %s487_s7 = scalar_lea.hbm %s746_s24, 64  ;;  %s491_s27 = scalar_lea.hbm %s803_s3, 256 }
  0xc9   : > { %p488_p3 = scmp.ne.s32.totalorder %s746_s24, %s487_s7  ;;  %p492_p1 = scmp.lt.u32.totalorder %s746_s24, %s803_s3 }
  0xca   : > { %p493_p2 = scmp.lt.u32.totalorder %s491_s27, %s487_s7  ;;  %p495_p8 = scmp.lt.u32.totalorder %s487_s7, %s746_s24 }
  0xcb   : > { %p489_p10 = pnand %p488_p3, %p812_p9 }
  0xcc   : > { %p494_p5 = por %p493_p2, %p492_p1 }
  0xcd   : > { %p490_p11 = pneg %p489_p10 }
  0xce   : > { %p496_p12 = por %p495_p8, %p494_p5 }
  0xd0   : > { %p497_p0 = pnand %p496_p12, %p490_p11 }
  0xd2   : > { %500 = shalt.err (!%p497_p0)
}
  0xd3   : > { %363 = dma.vmem_to_hbm [thread:$0]  (%p812_p9), %s748_s25, 64, %s746_s24, %s246_s15  }
  0xd4 PF: > { %p374_p7 = scmp.ge.s32.totalorder %s571_s19, 2  ;;  %s273_s21 = sand.u32 1, %s543_s12  }
  0xd5   : > { %p813_p13 = scmp.ne.s32.totalorder %s808_s4, 0  ;;  %s274_s26 = scalar_lea.sflag [#allocation4], %s273_s21 }
  0xd7   : > { %p370_p4 = pnand %p374_p7, %p813_p13 }
  0xd9   : > { %538 = dma.done.wait (!%p370_p4), %s274_s26, 64  }
  0xda   : > { %540 = vsyncadd (!%p370_p4), %s274_s26, 4294967232  ;;  %s19_s19 = sadd.s32 1, %s571_s19   ;;  %s814_s12 = smov %s547_s13 }
  0xdb   : > { %p16_p6 = scmp.ge.s32.totalorder %s19_s19, 6   ;;  %s815_s13 = smov %s551_s14 }
  0xdc   : > { %s816_s14 = smov %s674_s6  ;;  %s817_s15 = smov %s563_s17 }
  0xdd   : > { %s818_s16 = smov %s567_s18  ;;  %s819_s17 = smov %s822_s22 }
  0xde   : > { %s820_s18 = smov %s826_s23  ;;  %18 = sbr.rel (!%p16_p6) target bundleno = 7 (0x7), region = 77 }
  0xe5   :  { %279 = vsyncpa [#allocation3], 1 }
  0xe6   :  { %281 = vsyncpa [#allocation3 + $0x1], 1 }
  0xe7   :  { %282 = vsyncpa [#allocation4], 1 }
  0xe8   :  { %284 = vsyncpa [#allocation4 + $0x1], 1 }

</bundles_post_ra>
